<compile_context>
chip_gen: v6e
topology: v6e:2x2x1
jax: 0.10.0
libtpu: 0.0.40
codegen_flags: <defaults>
</compile_context>

<pallas_src>
import functools

import jax
import jax.numpy as jnp
from jax.experimental import pallas as pl
from jax.experimental.pallas import tpu as pltpu


def _round_up(n, m):
    return ((n + m - 1) // m) * m


def generator_kernel(x_ref,
                     w1_ref, w2_ref, w3_ref, w4_ref,
                     bias_ref,
                     out_ref,
                     *, negative_slope, widths):
    slope = jnp.float32(negative_slope)

    def lrelu(v):
        # 0 <= slope <= 1  =>  leaky_relu(v) == max(v, slope * v); single vmax.
        return jnp.maximum(v, slope * v)

    def matmul(a, w_ref):
        # Weights arrive already in their matmul dtype (pre-cast in wrapper);
        # only the (tiny) activation block is cast here. f32 accumulation.
        w = w_ref[...]
        return jnp.dot(a.astype(w.dtype), w, preferred_element_type=jnp.float32)

    # Biases: one (4, max_width) f32 slab, static prefix slices per layer.
    b_all = bias_ref[...]
    b1 = b_all[0:1, :widths[0]]
    b2 = b_all[1:2, :widths[1]]
    b3 = b_all[2:3, :widths[2]]
    b4 = b_all[3:4, :widths[3]]

    h = lrelu(matmul(x_ref[...], w1_ref) + b1)
    h = lrelu(matmul(h, w2_ref) + b2)
    h = lrelu(matmul(h, w3_ref) + b3)
    out_ref[...] = jnp.tanh(matmul(h, w4_ref) + b4).astype(out_ref.dtype)


def generator_forward(x, params, negative_slope, *,
                      block_b=512, use_bf16_matmul=False):
    """Forward pass of the Generator MLP.

    x: (B, g_input_dim) float32
    params: dict with w1..w4 shaped (in, out) and b1..b4 shaped (1, out), f32.
    use_bf16_matmul: bf16 MXU inputs (f32 accumulate / elementwise). Valid on
      v5e, v6e and v7x; opt-in because it will not meet 1e-5 tolerance.
    """
    assert 0.0 <= float(negative_slope) <= 1.0, (
        "leaky_relu-as-max requires 0 <= negative_slope <= 1")

    B, g_in = x.shape
    widths = tuple(params[f"w{i}"].shape[1] for i in range(1, 5))
    g_out = widths[-1]

    # Pad the batch only to sublane alignment (multiple of 8). The tail grid
    # block (if any) is masked by Pallas; rows are independent, so garbage in
    # masked rows never touches valid output.
    b_pad = _round_up(B, 8)
    if b_pad != B:
        x = jnp.pad(x, ((0, b_pad - B), (0, 0)))

    # Batch tile: whole batch for small B; for B >= 128 use 128-aligned blocks
    # capped at block_b, and keep at least two grid steps when possible so
    # dimension_semantics=("parallel",) shards across TensorCores (v7x).
    if b_pad < 128:
        tm = b_pad
    else:
        tm = min(block_b, _round_up(pl.cdiv(b_pad, 2), 128))
    grid = (pl.cdiv(b_pad, tm),)

    # Pre-cast weights once in the wrapper (no per-step in-kernel convert).
    wdtype = jnp.bfloat16 if use_bf16_matmul else jnp.float32
    ws = [params[f"w{i}"].astype(wdtype) for i in range(1, 5)]

    # Pack the four biases into a single (4, max_width) f32 slab.
    max_w = max(widths)
    bias_pack = jnp.zeros((4, max_w), jnp.float32)
    for i, w in enumerate(widths):
        bias_pack = bias_pack.at[i, :w].set(params[f"b{i + 1}"].reshape(-1))

    kernel = functools.partial(
        generator_kernel,
        negative_slope=float(negative_slope),
        widths=widths,
    )

    flops = 2 * b_pad * (g_in * widths[0] + widths[0] * widths[1]
                         + widths[1] * widths[2] + widths[2] * widths[3])
    bytes_accessed = (x.size * x.dtype.itemsize
                      + sum(w.size * w.dtype.itemsize for w in ws)
                      + bias_pack.size * 4
                      + b_pad * g_out * 4)

    def x_map(i):
        return (i, 0)

    def resident_map(i):
        # Weights / biases: same block every grid step -> stays VMEM-resident.
        return (0, 0)

    def full_spec(arr):
        return pl.BlockSpec(arr.shape, resident_map)

    out = pl.pallas_call(
        kernel,
        out_shape=jax.ShapeDtypeStruct((b_pad, g_out), jnp.float32),
        grid=grid,
        in_specs=[
            pl.BlockSpec((tm, g_in), x_map),
            full_spec(ws[0]), full_spec(ws[1]),
            full_spec(ws[2]), full_spec(ws[3]),
            full_spec(bias_pack),
        ],
        out_specs=pl.BlockSpec((tm, g_out), x_map),
        compiler_params=pltpu.CompilerParams(
            dimension_semantics=("parallel",)),
        cost_estimate=pl.CostEstimate(
            flops=flops,
            transcendentals=b_pad * g_out,
            bytes_accessed=bytes_accessed),
    )(
        x,
        ws[0], ws[1], ws[2], ws[3],
        bias_pack,
    )

    return out[:B]


def init_generator_params(key, g_input_dim, h_input_dim, g_out_dim):
    """Deterministic init mimicking PyTorch nn.Linear default (U[-1/sqrt(fan_in), +])."""
    dims = [
        (g_input_dim, h_input_dim),          # fc1
        (h_input_dim, h_input_dim * 2),      # fc2
        (h_input_dim * 2, h_input_dim * 4),  # fc3
        (h_input_dim * 4, g_out_dim),        # fc4
    ]
    params = {}
    for i, (fan_in, fan_out) in enumerate(dims, start=1):
        key, kw, kb = jax.random.split(key, 3)
        bound = 1.0 / (fan_in ** 0.5)
        params[f"w{i}"] = jax.random.uniform(
            kw, (fan_in, fan_out), jnp.float32, -bound, bound)
        params[f"b{i}"] = jax.random.uniform(
            kb, (1, fan_out), jnp.float32, -bound, bound)
    return params


def reference_forward(x, params, negative_slope):
    def lrelu(v):
        return jnp.where(v >= 0, v, negative_slope * v)
    h = lrelu(x @ params["w1"] + params["b1"])
    h = lrelu(h @ params["w2"] + params["b2"])
    h = lrelu(h @ params["w3"] + params["b3"])
    return jnp.tanh(h @ params["w4"] + params["b4"])


if __name__ == "__main__":
    # Small shapes consistent with the module's forward:
    #   latent dim 32, hidden 32 -> 64 -> 128, output (flattened image) 256.
    B, G_IN, H, G_OUT = 2, 32, 32, 256
    NEG_SLOPE = 0.2

    key = jax.random.PRNGKey(0)
    key, kx = jax.random.split(key)
    x = jax.random.normal(kx, (B, G_IN), dtype=jnp.float32)

    params = init_generator_params(key, G_IN, H, G_OUT)

    # f32 matmul path: matches the reference to tight tolerance.
    out = jax.block_until_ready(generator_forward(x, params, NEG_SLOPE))
    ref = reference_forward(x, params, NEG_SLOPE)
    assert out.shape == (B, G_OUT), out.shape
    assert jnp.allclose(out, ref, atol=1e-5, rtol=1e-5), "mismatch vs reference"

    # Multi-step grid + masked tail block (264 rows -> tm=256, grid=2, no
    # over-padding to 512 anymore).
    key, kx2 = jax.random.split(key)
    x_big = jax.random.normal(kx2, (264, G_IN), dtype=jnp.float32)
    out_big = jax.block_until_ready(generator_forward(x_big, params, NEG_SLOPE))
    ref_big = reference_forward(x_big, params, NEG_SLOPE)
    assert out_big.shape == (264, G_OUT), out_big.shape
    assert jnp.allclose(out_big, ref_big, atol=1e-5, rtol=1e-5), "batched mismatch"

    # Opt-in bf16 MXU path (pre-cast weights in wrapper); looser tolerance.
    out_bf16 = jax.block_until_ready(
        generator_forward(x_big, params, NEG_SLOPE, use_bf16_matmul=True))
    assert out_bf16.shape == (264, G_OUT), out_bf16.shape
    assert jnp.allclose(out_bf16, ref_big, atol=5e-2, rtol=5e-2), "bf16 mismatch"

    print("KERNEL_OK")
</pallas_src>

<mosaic_0001>
module attributes {stable_mosaic.version = 11 : i64} {
  func.func @generator_kernel(%arg0: i32, %arg1: memref<8x32xf32, #tpu.memory_space<vmem>>, %arg2: memref<32x32xf32, #tpu.memory_space<vmem>>, %arg3: memref<32x64xf32, #tpu.memory_space<vmem>>, %arg4: memref<64x128xf32, #tpu.memory_space<vmem>>, %arg5: memref<128x256xf32, #tpu.memory_space<vmem>>, %arg6: memref<4x256xf32, #tpu.memory_space<vmem>>, %arg7: memref<8x256xf32, #tpu.memory_space<vmem>>) attributes {dimension_semantics = [#tpu.dimension_semantics<parallel>], iteration_bounds = array<i64: 1>, scalar_prefetch = 0 : i64, scratch_operands = 0 : i64, tpu.core_type = #tpu.core_type<tc>, window_params = [{transform_indices = @transform_0, window_bounds = array<i64: 8, 32>}, {pipeline_mode = #tpu.pipeline_mode<synchronous>, transform_indices = @transform_1, window_bounds = array<i64: 32, 32>}, {pipeline_mode = #tpu.pipeline_mode<synchronous>, transform_indices = @transform_2, window_bounds = array<i64: 32, 64>}, {pipeline_mode = #tpu.pipeline_mode<synchronous>, transform_indices = @transform_3, window_bounds = array<i64: 64, 128>}, {pipeline_mode = #tpu.pipeline_mode<synchronous>, transform_indices = @transform_4, window_bounds = array<i64: 128, 256>}, {pipeline_mode = #tpu.pipeline_mode<synchronous>, transform_indices = @transform_5, window_bounds = array<i64: 4, 256>}, {transform_indices = @transform_6, window_bounds = array<i64: 8, 256>}]} {
    %c0 = arith.constant 0 : index
    %c0_0 = arith.constant 0 : index
    %0 = vector.load %arg6[%c0, %c0_0] : memref<4x256xf32, #tpu.memory_space<vmem>>, vector<4x256xf32>
    %1 = vector.extract_strided_slice %0 {offsets = [0, 0], sizes = [1, 32], strides = [1, 1]} : vector<4x256xf32> to vector<1x32xf32>
    %2 = vector.extract_strided_slice %0 {offsets = [1, 0], sizes = [1, 64], strides = [1, 1]} : vector<4x256xf32> to vector<1x64xf32>
    %3 = vector.extract_strided_slice %0 {offsets = [2, 0], sizes = [1, 128], strides = [1, 1]} : vector<4x256xf32> to vector<1x128xf32>
    %4 = vector.extract_strided_slice %0 {offsets = [3, 0], sizes = [1, 256], strides = [1, 1]} : vector<4x256xf32> to vector<1x256xf32>
    %c0_1 = arith.constant 0 : index
    %c0_2 = arith.constant 0 : index
    %5 = vector.load %arg1[%c0_1, %c0_2] : memref<8x32xf32, #tpu.memory_space<vmem>>, vector<8x32xf32>
    %c0_3 = arith.constant 0 : index
    %c0_4 = arith.constant 0 : index
    %6 = vector.load %arg2[%c0_3, %c0_4] : memref<32x32xf32, #tpu.memory_space<vmem>>, vector<32x32xf32>
    %cst = arith.constant dense<0.000000e+00> : vector<8x32xf32>
    %7 = tpu.matmul %5, %6, %cst {dimension_numbers = #tpu.dot_dimension_numbers<[1], [0], [0], [1], [0, 0, 1, 1], [], []>} : vector<8x32xf32>, vector<32x32xf32>, vector<8x32xf32> -> vector<8x32xf32>
    %8 = vector.broadcast %1 : vector<1x32xf32> to vector<8x32xf32>
    %9 = arith.addf %7, %8 : vector<8x32xf32>
    %cst_5 = arith.constant 2.000000e-01 : f32
    %10 = vector.broadcast %cst_5 : f32 to vector<8x32xf32>
    %11 = arith.mulf %10, %9 : vector<8x32xf32>
    %12 = arith.maximumf %9, %11 : vector<8x32xf32>
    %c0_6 = arith.constant 0 : index
    %c0_7 = arith.constant 0 : index
    %13 = vector.load %arg3[%c0_6, %c0_7] : memref<32x64xf32, #tpu.memory_space<vmem>>, vector<32x64xf32>
    %cst_8 = arith.constant dense<0.000000e+00> : vector<8x64xf32>
    %14 = tpu.matmul %12, %13, %cst_8 {dimension_numbers = #tpu.dot_dimension_numbers<[1], [0], [0], [1], [0, 0, 1, 1], [], []>} : vector<8x32xf32>, vector<32x64xf32>, vector<8x64xf32> -> vector<8x64xf32>
    %15 = vector.broadcast %2 : vector<1x64xf32> to vector<8x64xf32>
    %16 = arith.addf %14, %15 : vector<8x64xf32>
    %cst_9 = arith.constant 2.000000e-01 : f32
    %17 = vector.broadcast %cst_9 : f32 to vector<8x64xf32>
    %18 = arith.mulf %17, %16 : vector<8x64xf32>
    %19 = arith.maximumf %16, %18 : vector<8x64xf32>
    %c0_10 = arith.constant 0 : index
    %c0_11 = arith.constant 0 : index
    %20 = vector.load %arg4[%c0_10, %c0_11] : memref<64x128xf32, #tpu.memory_space<vmem>>, vector<64x128xf32>
    %cst_12 = arith.constant dense<0.000000e+00> : vector<8x128xf32>
    %21 = tpu.matmul %19, %20, %cst_12 {dimension_numbers = #tpu.dot_dimension_numbers<[1], [0], [0], [1], [0, 0, 1, 1], [], []>} : vector<8x64xf32>, vector<64x128xf32>, vector<8x128xf32> -> vector<8x128xf32>
    %22 = vector.broadcast %3 : vector<1x128xf32> to vector<8x128xf32>
    %23 = arith.addf %21, %22 : vector<8x128xf32>
    %cst_13 = arith.constant 2.000000e-01 : f32
    %24 = vector.broadcast %cst_13 : f32 to vector<8x128xf32>
    %25 = arith.mulf %24, %23 : vector<8x128xf32>
    %26 = arith.maximumf %23, %25 : vector<8x128xf32>
    %c0_14 = arith.constant 0 : index
    %c0_15 = arith.constant 0 : index
    %27 = vector.load %arg5[%c0_14, %c0_15] : memref<128x256xf32, #tpu.memory_space<vmem>>, vector<128x256xf32>
    %cst_16 = arith.constant dense<0.000000e+00> : vector<8x256xf32>
    %28 = tpu.matmul %26, %27, %cst_16 {dimension_numbers = #tpu.dot_dimension_numbers<[1], [0], [0], [1], [0, 0, 1, 1], [], []>} : vector<8x128xf32>, vector<128x256xf32>, vector<8x256xf32> -> vector<8x256xf32>
    %29 = vector.broadcast %4 : vector<1x256xf32> to vector<8x256xf32>
    %30 = arith.addf %28, %29 : vector<8x256xf32>
    %31 = math.tanh %30 : vector<8x256xf32>
    %c0_17 = arith.constant 0 : index
    %c0_18 = arith.constant 0 : index
    %32 = vector.load %arg7[%c0_17, %c0_18] : memref<8x256xf32, #tpu.memory_space<vmem>>, vector<8x256xf32>
    tpu.vector_store %arg7[%c0_17, %c0_18], %31 {strides = array<i32>} : memref<8x256xf32, #tpu.memory_space<vmem>>, vector<8x256xf32>,
    return
  }
  func.func @transform_0(%arg0: i32) -> (i32, i32) {
    %c0_i32 = arith.constant 0 : i32
    %c0_i32_0 = arith.constant 0 : i32
    return %arg0, %c0_i32 : i32, i32
  }
  func.func @transform_1(%arg0: i32) -> (i32, i32) {
    %c0_i32 = arith.constant 0 : i32
    %c0_i32_0 = arith.constant 0 : i32
    %c0_i32_1 = arith.constant 0 : i32
    return %c0_i32, %c0_i32_0 : i32, i32
  }
  func.func @transform_2(%arg0: i32) -> (i32, i32) {
    %c0_i32 = arith.constant 0 : i32
    %c0_i32_0 = arith.constant 0 : i32
    %c0_i32_1 = arith.constant 0 : i32
    return %c0_i32, %c0_i32_0 : i32, i32
  }
  func.func @transform_3(%arg0: i32) -> (i32, i32) {
    %c0_i32 = arith.constant 0 : i32
    %c0_i32_0 = arith.constant 0 : i32
    %c0_i32_1 = arith.constant 0 : i32
    return %c0_i32, %c0_i32_0 : i32, i32
  }
  func.func @transform_4(%arg0: i32) -> (i32, i32) {
    %c0_i32 = arith.constant 0 : i32
    %c0_i32_0 = arith.constant 0 : i32
    %c0_i32_1 = arith.constant 0 : i32
    return %c0_i32, %c0_i32_0 : i32, i32
  }
  func.func @transform_5(%arg0: i32) -> (i32, i32) {
    %c0_i32 = arith.constant 0 : i32
    %c0_i32_0 = arith.constant 0 : i32
    %c0_i32_1 = arith.constant 0 : i32
    return %c0_i32, %c0_i32_0 : i32, i32
  }
  func.func @transform_6(%arg0: i32) -> (i32, i32) {
    %c0_i32 = arith.constant 0 : i32
    %c0_i32_0 = arith.constant 0 : i32
    return %arg0, %c0_i32 : i32, i32
  }
}

</mosaic_0001>

<bundles_post_ra>
// kernel: tpu_custom_call.1
= control target key start
LH: loop header
LB: loop body
LE: loop exit
PB: predicated region body
PF: predicated region fallthrough
CT: control target
= control target key end

     0   :  { %11 = vsyncpa [#allocation3], 0  ;;  %s813_s0 = inlined_call_operand.hbm [shape: f32[8,32], index: 0, kind: input, shape index: {}]   ;;  %s814_s1 = inlined_call_operand.hbm [shape: f32[32,32], index: 1, kind: input, shape index: {}]   ;;  %s815_s2 = inlined_call_operand.hbm [shape: f32[32,64], index: 2, kind: input, shape index: {}]   ;;  %s816_s3 = inlined_call_operand.hbm [shape: f32[64,128], index: 3, kind: input, shape index: {}]   ;;  %s817_s4 = inlined_call_operand.hbm [shape: f32[128,256], index: 4, kind: input, shape index: {}]   ;;  %s818_s5 = inlined_call_operand.vmem [shape: f32[4,256], index: 5, kind: input, shape index: {}]   ;;  %s819_s6 = inlined_call_operand.hbm [shape: f32[8,256], index: 6, kind: output, shape index: {}]  }
   0x1   :  { %12 = vsyncpa [#allocation6], 0 }
   0x2   :  { %13 = vsyncpa [#allocation9], 0 }
   0x3   :  { %14 = vsyncpa [#allocation4], 0  ;;  %s697_s21 = smov [#allocation5]  }
   0x4   :  { %s30_s22 = sshll.u32 %s697_s21, 4  ;;  %s31_s22 = int_to_ptr.vmem [resolvable:$true] %s30_s22 }
   0x5   :  { %s577_s23 = scalar_lea.vmem %s31_s22, 512  ;;  %p582_p1 = scmp.lt.s32.totalorder %s31_s22, %s31_s22 }
   0x6   :  { %p578_p0 = scmp.ne.s32.totalorder %s31_s22, %s577_s23  ;;  %p583_p2 = scmp.lt.s32.totalorder %s577_s23, %s577_s23 }
   0x8   :  { %p584_p3 = por %p583_p2, %p582_p1 }
   0xa   :  { %p585_p4 = pnand %p584_p3, %p578_p0 }
   0xc   :  { %588 = shalt.err (!%p585_p4)
}
   0xd   :  { %s698_s24 = smov 128   ;;  %s699_s25 = smov 8  }
   0xe   :  { %36 = dma.hbm_to_vmem [thread:$0]  %s814_s1, 512, %s31_s22, [#allocation6], %s698_s24, %s698_s24, %s699_s25  }
   0xf   :  { %s700_s28 = smov [#allocation8]   ;;  %s701_s30 = smov [#allocation2]  }
  0x10   :  { %s54_s29 = sshll.u32 %s700_s28, 4  ;;  %s21_s7 = sshll.u32 %s701_s30, 4  ;;  %s55_s29 = int_to_ptr.vmem [resolvable:$true] %s54_s29  ;;  %s22_s7 = int_to_ptr.vmem [resolvable:$true] %s21_s7 }
  0x11   :  { %s597_s8 = scalar_lea.vmem %s55_s29, 1024  ;;  %p602_p6 = scmp.lt.s32.totalorder %s55_s29, %s55_s29 }
  0x12   :  { %p598_p5 = scmp.ne.s32.totalorder %s55_s29, %s597_s8  ;;  %p603_p7 = scmp.lt.s32.totalorder %s597_s8, %s597_s8 }
  0x14   :  { %p604_p8 = por %p603_p7, %p602_p6 }
  0x16   :  { %p605_p9 = pnand %p604_p8, %p598_p5 }
  0x18   :  { %608 = shalt.err (!%p605_p9)
}
  0x19   :  { %60 = dma.hbm_to_vmem [thread:$0]  %s816_s3, 1024, %s55_s29, [#allocation9], %s698_s24, %s698_s24, %s699_s25  }
  0x1a   :  { %s617_s1 = scalar_lea.vmem %s22_s7, 128  ;;  %p622_p11 = scmp.lt.s32.totalorder %s22_s7, %s22_s7 }
  0x1b   :  { %p618_p10 = scmp.ne.s32.totalorder %s22_s7, %s617_s1  ;;  %p623_p12 = scmp.lt.s32.totalorder %s617_s1, %s617_s1 }
  0x1d   :  { %p624_p13 = por %p623_p12, %p622_p11 }
  0x1f   :  { %p625_p0 = pnand %p624_p13, %p618_p10 }
  0x21   :  { %628 = shalt.err (!%p625_p0)
}
  0x22   :  { %24 = dma.hbm_to_vmem [thread:$0]  %s813_s0, 128, %s22_s7, [#allocation3]  }
  0x23   :  { %s702_s13 = smov [#allocation7]   ;;  %s703_s15 = smov [#allocation10]  }
  0x24   :  { %s42_s14 = sshll.u32 %s702_s13, 4  ;;  %s66_s16 = sshll.u32 %s703_s15, 4  ;;  %s43_s14 = int_to_ptr.vmem [resolvable:$true] %s42_s14  ;;  %s67_s16 = int_to_ptr.vmem [resolvable:$true] %s66_s16 }
  0x25   :  { %s637_s17 = scalar_lea.vmem %s43_s14, 512  ;;  %p642_p2 = scmp.lt.s32.totalorder %s43_s14, %s43_s14 }
  0x26   :  { %p638_p1 = scmp.ne.s32.totalorder %s43_s14, %s637_s17  ;;  %p643_p3 = scmp.lt.s32.totalorder %s637_s17, %s637_s17 }
  0x28   :  { %p644_p4 = por %p643_p3, %p642_p2 }
  0x2a   :  { %p645_p5 = pnand %p644_p4, %p638_p1 }
  0x2c   :  { %648 = shalt.err (!%p645_p5)
}
  0x2d   :  { %48 = dma.hbm_to_vmem [thread:$0]  %s815_s2, 512, %s43_s14, [#allocation6], %s698_s24, %s698_s24, %s699_s25  }
  0x2e   :  { %s657_s0 = scalar_lea.vmem %s67_s16, 4096  ;;  %p662_p7 = scmp.lt.s32.totalorder %s67_s16, %s67_s16 }
  0x2f   :  { %p658_p6 = scmp.ne.s32.totalorder %s67_s16, %s657_s0  ;;  %p663_p8 = scmp.lt.s32.totalorder %s657_s0, %s657_s0 }
  0x31   :  { %p664_p9 = por %p663_p8, %p662_p7 }
  0x33   :  { %p665_p10 = pnand %p664_p9, %p658_p6 }
  0x35   :  { %668 = shalt.err (!%p665_p10)
}
  0x36   :  { %s704_s19 = smov 256   ;;  %s705_s20 = smov 16  }
  0x37   :  { %72 = dma.hbm_to_vmem [thread:$0]  %s817_s4, 4096, %s67_s16, [#allocation9], %s704_s19, %s704_s19, %s705_s20  }
  0x38   :  { %689 = dma.done.wait [#allocation3], 128  }
  0x39   :  { %690 = vsyncadd [#allocation3], 4294967168 }
  0x3a   :  { %691 = dma.done.wait [#allocation6], 1024  }
  0x3b   :  { %692 = vsyncadd [#allocation6], 4294966272 }
  0x3c   :  { %693 = dma.done.wait [#allocation9], 5120  }
  0x3d   :  { %694 = vsyncadd [#allocation9], 4294962176  ;;  %v706_v0 = vmov 0.0   ;;  %vm707_vm0 = vmmov 0   ;;  %v95_v1 = vld [vmem:[#allocation5 + $0x18] sm:$0xff]  ;;  %v94_v2 = vld [vmem:[#allocation5 + $0x10] sm:$0xff]  ;;  %v96_v10 = vlaneseq }
  0x3e   :  { %512 = vmatprep.subr.mxu0 %v706_v0  ;;  %520 = vmatprep.mubr.msk.f32.mxu0 %vm707_vm0, %v706_v0  ;;  %v93_v3 = vld [vmem:[#allocation5 + $0x8] sm:$0xff]  ;;  %v92_v4 = vld [vmem:[#allocation5] sm:$0xff]  ;;  %v91_v5 = vld [vmem:[#allocation2] sm:$0xff]  ;;  %vm100_vm1 = vcmask 261120   ;;  %vm271_vm2 = vcmask 523264  }
  0x3f   :  { %462 = vmatprep.mubr.f32.mxu1 %v706_v0  ;;  %513 = vmatpush3.msra.mxu0 %v95_v1  ;;  %v179_v6 = vld [vmem:[#allocation7 + $0x18] sm:$0xff]  ;;  %v178_v7 = vld [vmem:[#allocation7 + $0x10] sm:$0xff]  ;;  %v177_v8 = vld [vmem:[#allocation7 + $0x8] sm:$0xff]  ;;  %v783_v11 = vshrl.u32 %v96_v10, 7 }
  0x40   :  { %514 = vmatprep.subr.mxu0 %v706_v0  ;;  %v176_v9 = vld [vmem:[#allocation7] sm:$0xff]  ;;  %v789_v13 = vld [vmem:[%s818_s5] sm:$0xff]  ;;  %v265_v21 = vld [vmem:[#allocation8 + $0x30] sm:$0xff]  ;;  %s708_s5 = smov [#allocation11]  }
  0x41   :  { %515 = vmatpush3.msra.mxu0 %v94_v2  ;;  %v98_v12 = vsub.s32 0, %v783_v11  ;;  %v266_v20 = vld [vmem:[#allocation8 + $0x38] sm:$0xff]  ;;  %v264_v22 = vld [vmem:[#allocation8 + $0x28] sm:$0xff]  ;;  %v263_v23 = vld [vmem:[#allocation8 + $0x20] sm:$0xff]  ;;  %v182_v53 = vsub.s32 1, %v783_v11  ;;  %v382_v10 = vsub.s32 3, %v783_v11 }
  0x42   :  { %516 = vmatprep.subr.mxu0 %v706_v0  ;;  %v262_v24 = vld [vmem:[#allocation8 + $0x18] sm:$0xff]  ;;  %v261_v25 = vld [vmem:[#allocation8 + $0x10] sm:$0xff]  ;;  %v260_v26 = vld [vmem:[#allocation8 + $0x8] sm:$0xff]  ;;  %s479_s23 = sshll.u32 %s708_s5, 4  ;;  %s480_s23 = int_to_ptr.vmem [resolvable:$true] %s479_s23 }
  0x43   :  { %517 = vmatpush3.msra.mxu0 %v93_v3  ;;  %v99_v14 = vrot.slane %v789_v13, %v98_v12  ;;  %v259_v27 = vld [vmem:[#allocation8] sm:$0xff]  ;;  %v378_v28 = vld [vmem:[#allocation10 + $0xf8] sm:$0xff]  ;;  %v377_v29 = vld [vmem:[#allocation10 + $0xf0] sm:$0xff]  ;;  %v183_v54 = vrot.slane %v789_v13, %v182_v53  ;;  %v269_v3 = vsub.s32 2, %v783_v11  ;;  %v386_v12 = vsub.s32 7, %v783_v11  ;;  %s669_s24 = scalar_lea.vmem %s480_s23, 256  ;;  %p674_p12 = scmp.lt.s32.totalorder %s480_s23, %s480_s23 }
  0x44   :  { %518 = vmatprep.subr.mxu0 %v706_v0  ;;  %v376_v30 = vld [vmem:[#allocation10 + $0xe8] sm:$0xff]  ;;  %398 = vmatprep.subr.mxu1 %v378_v28  ;;  %v375_v31 = vld [vmem:[#allocation10 + $0xe0] sm:$0xff]  ;;  %v374_v32 = vld [vmem:[#allocation10 + $0xd8] sm:$0xff]  ;;  %p670_p11 = scmp.ne.s32.totalorder %s480_s23, %s669_s24  ;;  %p675_p13 = scmp.lt.s32.totalorder %s669_s24, %s669_s24 }
  0x45   :  { %519 = vmatpush3.msra.mxu0 %v92_v4  ;;  %399 = vmatpush1.msra.mxu1 %v377_v29  ;;  %v373_v33 = vld [vmem:[#allocation10 + $0xd0] sm:$0xff]  ;;  %v372_v34 = vld [vmem:[#allocation10 + $0xc8] sm:$0xff]  ;;  %v371_v35 = vld [vmem:[#allocation10 + $0xc0] sm:$0xff]  ;;  %v270_v4 = vrot.slane %v789_v13, %v269_v3 }
  0x46   :  { %521 = vmatmul.mubr.msk.f32.vlgmr.msra.gmra.mxu0 %vm100_vm1, %v91_v5  ;;  %523 = vmatprep.subr.mxu0 %v706_v0  ;;  %v370_v36 = vld [vmem:[#allocation10 + $0xb8] sm:$0xff]  ;;  %v369_v37 = vld [vmem:[#allocation10 + $0xb0] sm:$0xff]  ;;  %v368_v38 = vld [vmem:[#allocation10 + $0xa8] sm:$0xff]  ;;  %p676_p0 = por %p675_p13, %p674_p12 }
  0x47   :  { %531 = vmatprep.mubr.msk.f32.mxu0 %vm707_vm0, %v706_v0  ;;  %524 = vmatpush3.msra.mxu0 %v179_v6  ;;  %v367_v39 = vld [vmem:[#allocation10 + $0xa0] sm:$0xff]  ;;  %v366_v40 = vld [vmem:[#allocation10 + $0x98] sm:$0xff]  ;;  %v365_v41 = vld [vmem:[#allocation10 + $0x90] sm:$0xff] }
  0x48   :  { %525 = vmatprep.subr.mxu0 %v706_v0  ;;  %400 = vmatprep.subr.mxu1 %v376_v30  ;;  %v364_v42 = vld [vmem:[#allocation10 + $0x88] sm:$0xff]  ;;  %v363_v43 = vld [vmem:[#allocation10 + $0x80] sm:$0xff]  ;;  %v362_v44 = vld [vmem:[#allocation10 + $0x78] sm:$0xff]  ;;  %p677_p1 = pnand %p676_p0, %p670_p11 }
  0x49   :  { %526 = vmatpush3.msra.mxu0 %v178_v7  ;;  %401 = vmatpush1.msra.mxu1 %v375_v31  ;;  %v361_v45 = vld [vmem:[#allocation10 + $0x70] sm:$0xff]  ;;  %v360_v46 = vld [vmem:[#allocation10 + $0x68] sm:$0xff]  ;;  %v359_v47 = vld [vmem:[#allocation10 + $0x60] sm:$0xff] }
  0x4a   :  { %527 = vmatprep.subr.mxu0 %v706_v0  ;;  %402 = vmatprep.subr.mxu1 %v374_v32  ;;  %v358_v48 = vld [vmem:[#allocation10 + $0x58] sm:$0xff]  ;;  %v357_v49 = vld [vmem:[#allocation10 + $0x50] sm:$0xff]  ;;  %v356_v50 = vld [vmem:[#allocation10 + $0x48] sm:$0xff] }
  0x4b   :  { %528 = vmatpush3.msra.mxu0 %v177_v8  ;;  %403 = vmatpush1.msra.mxu1 %v373_v33  ;;  %v355_v51 = vld [vmem:[#allocation10 + $0x40] sm:$0xff]  ;;  %v354_v52 = vld [vmem:[#allocation10 + $0x38] sm:$0xff]  ;;  %v353_v60 = vld [vmem:[#allocation10 + $0x30] sm:$0xff] }
  0x4c   :  { %529 = vmatprep.subr.mxu0 %v706_v0  ;;  %404 = vmatprep.subr.mxu1 %v372_v34  ;;  %v352_v61 = vld [vmem:[#allocation10 + $0x28] sm:$0xff]  ;;  %v351_v62 = vld [vmem:[#allocation10 + $0x20] sm:$0xff]  ;;  %v350_v63 = vld [vmem:[#allocation10 + $0x18] sm:$0xff] }
  0x4d   :  { %530 = vmatpush3.msra.mxu0 %v176_v9  ;;  %405 = vmatpush1.msra.mxu1 %v371_v35  ;;  %v348_v1 = vld [vmem:[#allocation10 + $0x8] sm:$0xff]  ;;  %v347_v2 = vld [vmem:[#allocation10] sm:$0xff] }
  0x4e   :  { %534 = vmatprep.subr.mxu0 %v706_v0  ;;  %406 = vmatprep.subr.mxu1 %v370_v36 }
  0x4f   :  { %407 = vmatpush1.msra.mxu1 %v369_v37 }
  0x50   :  { %408 = vmatprep.subr.mxu1 %v368_v38 }
  0x51   :  { %409 = vmatpush1.msra.mxu1 %v367_v39 }
  0x52   :  { %410 = vmatprep.subr.mxu1 %v366_v40 }
  0x53   :  { %411 = vmatpush1.msra.mxu1 %v365_v41 }
  0x54   :  { %412 = vmatprep.subr.mxu1 %v364_v42 }
  0x55   :  { %413 = vmatpush1.msra.mxu1 %v363_v43 }
  0x56   :  { %414 = vmatprep.subr.mxu1 %v362_v44 }
  0x57   :  { %415 = vmatpush1.msra.mxu1 %v361_v45 }
  0x58   :  { %416 = vmatprep.subr.mxu1 %v360_v46 }
  0x59   :  { %417 = vmatpush1.msra.mxu1 %v359_v47 }
  0x5a   :  { %418 = vmatprep.subr.mxu1 %v358_v48 }
  0x5b   :  { %419 = vmatpush1.msra.mxu1 %v357_v49 }
  0x5c   :  { %420 = vmatprep.subr.mxu1 %v356_v50 }
  0x5d   :  { %421 = vmatpush1.msra.mxu1 %v355_v51 }
  0x5e   :  { %422 = vmatprep.subr.mxu1 %v354_v52 }
  0x5f   :  { %423 = vmatpush1.msra.mxu1 %v353_v60 }
  0x60   :  { %424 = vmatprep.subr.mxu1 %v352_v61 }
  0x61   :  { %425 = vmatpush1.msra.mxu1 %v351_v62 }
  0x62   :  { %426 = vmatprep.subr.mxu1 %v350_v63 }
 0x106   :  { %v170_v15 = vpop.f32.mrf.mxu0 }
 0x107   :  { %v171_v16 = vadd.f32 %v170_v15, %v99_v14  ;;  %v383_v14 = vrot.slane %v789_v13, %v382_v10  ;;  %v387_v15 = vrot.slane %v789_v13, %v386_v12 }
 0x108   :  { %v522_v17 = vpop.f32.mrf.mxu0 }
 0x109   :  { %v174_v18 = vmul.f32 0.2, %v171_v16  ;;  %v397_v17 = vrot.slane %v387_v15, %v382_v10 }
 0x10b   :  { %v175_v19 = vmax.f32 %v171_v16, %v174_v18  ;;  %v393_v16 = vrot.slane %v383_v14, %v382_v10 }
 0x10d   :  { %532 = vmatmul.mubr.msk.f32.vlgmr.msra.gmra.mxu0 %vm100_vm1, %v175_v19 }
 0x10e   :  { %535 = vmatpush3.msra.mxu0 %v266_v20  ;;  %550 = vmatprep.mubr.msk.f32.mxu0 %vm707_vm0, %v706_v0 }
 0x10f   :  { %536 = vmatprep.subr.mxu0 %v706_v0 }
 0x110   :  { %537 = vmatpush3.msra.mxu0 %v265_v21 }
 0x111   :  { %538 = vmatprep.subr.mxu0 %v706_v0 }
 0x112   :  { %539 = vmatpush3.msra.mxu0 %v264_v22 }
 0x113   :  { %540 = vmatprep.subr.mxu0 %v706_v0 }
 0x114   :  { %541 = vmatpush3.msra.mxu0 %v263_v23 }
 0x115   :  { %542 = vmatprep.subr.mxu0 %v706_v0 }
 0x116   :  { %543 = vmatpush3.msra.mxu0 %v262_v24 }
 0x117   :  { %544 = vmatprep.subr.mxu0 %v706_v0 }
 0x118   :  { %545 = vmatpush3.msra.mxu0 %v261_v25 }
 0x119   :  { %546 = vmatprep.subr.mxu0 %v706_v0 }
 0x11a   :  { %547 = vmatpush3.msra.mxu0 %v260_v26 }
 0x11b   :  { %548 = vmatprep.subr.mxu0 %v706_v0  ;;  %v349_v0 = vld [vmem:[#allocation10 + $0x10] sm:$0xff] }
 0x11c   :  { %549 = vmatpush3.msra.mxu0 %v259_v27  ;;  %427 = vmatpush1.msra.mxu1 %v349_v0 }
 0x11d   :  { %428 = vmatprep.subr.mxu1 %v348_v1 }
 0x11e   :  { %429 = vmatpush1.msra.mxu1 %v347_v2 }
 0x1cd   :  { %v253_v55 = vpop.f32.mrf.mxu0 }
 0x1ce   :  { %v254_v56 = vadd.f32 %v253_v55, %v183_v54 }
 0x1cf   :  { %v533_v57 = vpop.f32.mrf.mxu0 }
 0x1d0   :  { %v257_v58 = vmul.f32 0.2, %v254_v56 }
 0x1d2   :  { %v258_v59 = vmax.f32 %v254_v56, %v257_v58 }
 0x1d4   :  { %551 = vmatmul.mubr.msk.f32.vlgmr.msra.gmra.mxu0 %vm271_vm2, %v258_v59 }
 0x294   :  { %v341_v5 = vpop.f32.mrf.mxu0 }
 0x295   :  { %v342_v6 = vadd.f32 %v341_v5, %v270_v4 }
 0x296   :  { %v552_v7 = vpop.f32.mrf.mxu0 }
 0x297   :  { %v345_v8 = vmul.f32 0.2, %v342_v6 }
 0x299   :  { %v346_v9 = vmax.f32 %v342_v6, %v345_v8 }
 0x29b   :  { %463 = vmatmul.mubr.f32.vlgmr.msra.gmra.mxu1 %v346_v9 }
 0x35b   :  { %v464_v18 = vpop.f32.mrf.mxu1 }
 0x35c   :  { %v465_v19 = vadd.f32 %v464_v18, %v393_v16 }
 0x35d   :  { %v466_v20 = vpop.f32.mrf.mxu1 }
 0x35e   :  { %565 = vtanh.f32 %v465_v19  ;;  %v467_v21 = vadd.f32 %v466_v20, %v397_v17 }
 0x360   :  { %567 = vtanh.f32 %v467_v21 }
 0x36b   :  { %v566_v22 = vpop.eup %565 }
 0x36c   :  { %471 = vst [vmem:[#allocation11] sm:$0xff] %v566_v22 }
 0x36d   :  { %v568_v23 = vpop.eup %567 }
 0x36e   :  { %472 = vst [vmem:[#allocation11 + $0x8] sm:$0xff] %v568_v23 }
 0x36f   :  { %680 = shalt.err (!%p677_p1)
}
 0x370   :  { %482 = dma.vmem_to_hbm [thread:$0]  %s480_s23, 256, %s819_s6, [#allocation4]  }
 0x371   :  { %695 = dma.done.wait [#allocation4], 256  }
 0x372   :  { %696 = vsyncadd [#allocation4], 4294967040 }
 0x373   :  { %486 = vsyncpa [#allocation3], 1 }
 0x374   :  { %487 = vsyncpa [#allocation6], 1 }
 0x375   :  { %488 = vsyncpa [#allocation9], 1 }
 0x376   :  { %489 = vsyncpa [#allocation4], 1 }

</bundles_post_ra>
